<compile_context>
chip_gen: v7x
topology: tpu7x:2x2x1
jax: 0.10.0
libtpu: 0.0.40
codegen_flags: <defaults>
</compile_context>

<pallas_src>
import functools

import jax
import jax.numpy as jnp
from jax.experimental import pallas as pl
from jax.experimental.pallas import tpu as pltpu


# ------------------------- model config (small) ----------------------------
CFG = dict(
    vocab_size=100,
    hidden=32,
    num_layers=2,
    num_heads=2,
    head_dim=16,          # hidden // num_heads
    intermediate=64,
    max_position=16,
    type_vocab=2,
    num_labels=3,
    lane_pad=128,         # classifier head padded to a full lane for dense stores
    ln_eps=1e-12,
)


# ----------------------------- fused kernel --------------------------------
def _bert_kernel(
    emb_ref, mask_ref, eg_ref, eb_ref,
    wqkv_ref, bqkv_ref, wo_ref, bo_ref, ln1g_ref, ln1b_ref,
    w1_ref, b1_ref, w2_ref, b2_ref, ln2g_ref, ln2b_ref,
    wp_ref, bp_ref, wc_ref, bc_ref,
    probs_ref, logits_ref,
    x_sc,
    *, S, nH, dh, eps, scale,
):
    """Grid = (batch_tile, layer). One sequence per batch tile; hidden state
    for that sequence lives in x_sc (VMEM) across the layer axis."""
    l = pl.program_id(1)
    H = nH * dh
    cdt = jnp.bfloat16  # MXU operand dtype; accumulation / elementwise math in f32

    def layernorm(x, g, b):
        mu = jnp.mean(x, axis=-1, keepdims=True)
        xc = x - mu
        var = jnp.mean(xc * xc, axis=-1, keepdims=True)
        return xc * jax.lax.rsqrt(var + eps) * g + b

    def matmul(a, w):
        # weights arrive already in bf16 at rest; only the activation is cast
        return jnp.dot(a.astype(cdt), w, preferred_element_type=jnp.float32)

    def bdot(a, b, dims):
        # head-batched dot_general (batch dim 0 on both operands), f32 accumulate
        return jax.lax.dot_general(a.astype(cdt), b, dims,
                                   preferred_element_type=jnp.float32)

    def erf(z):
        # Abramowitz & Stegun 7.1.26: |err| < 1.5e-7 -> matches HF exact-erf GELU
        a = jnp.abs(z)
        t = 1.0 / (1.0 + 0.3275911 * a)
        poly = t * (0.254829592 + t * (-0.284496736 + t * (1.421413741
                  + t * (-1.453152027 + t * 1.061405429))))
        r = 1.0 - poly * jnp.exp(-(a * a))
        return jnp.where(z >= 0.0, r, -r)

    # --- layer 0: fused embedding LayerNorm -------------------------------
    @pl.when(l == 0)
    def _init():
        x_sc[...] = layernorm(emb_ref[0], eg_ref[...], eb_ref[...])

    x = x_sc[...]                                            # (S, H) f32
    mask = mask_ref[0]                                       # (1, S) additive key mask

    # --- self-attention: all heads batched on the leading axis -------------
    # QKV weights are stored head-major (nH, H, 3*dh), so one batched dot_general
    # produces every head's q|k|v with no per-head slicing / relayout.
    x_h = jnp.broadcast_to(x.astype(cdt), (nH, S, H))
    qkv = bdot(x_h, wqkv_ref[0], (((2,), (1,)), ((0,), (0,)))) + bqkv_ref[0]  # (nH,S,3dh)
    q = qkv[..., 0 * dh:1 * dh].astype(cdt)
    k = qkv[..., 1 * dh:2 * dh].astype(cdt)
    v = qkv[..., 2 * dh:3 * dh].astype(cdt)

    scores = bdot(q, k, (((2,), (2,)), ((0,), (0,)))) * scale      # (nH, S, S)
    scores = scores + mask                                         # mask keys
    mx = jnp.max(scores, axis=-1, keepdims=True)
    e = jnp.exp(scores - mx)
    p = e / jnp.sum(e, axis=-1, keepdims=True)                     # exact normalize
    probs_ref[0, 0] = p                                            # HF layout slot (nH,S,S)

    ctx = bdot(p, v, (((2,), (1,)), ((0,), (0,))))                 # (nH, S, dh)
    # output projection is head-batched (Wo stored as (nH, dh, H)); merging heads
    # is then just a sum over the leading axis (no lane concat / transpose).
    proj = bdot(ctx, wo_ref[0], (((2,), (1,)), ((0,), (0,))))      # (nH, S, H)
    attn = jnp.sum(proj, axis=0) + bo_ref[0] + x                   # (S, H) residual
    x1 = layernorm(attn, ln1g_ref[0], ln1b_ref[0])

    # --- feed-forward + residual + LN2 (fused) ------------------------------
    hid = matmul(x1, w1_ref[0]) + b1_ref[0]
    hid = 0.5 * hid * (1.0 + erf(hid * 0.7071067811865476))        # exact-erf GELU
    x2 = layernorm(matmul(hid, w2_ref[0]) + b2_ref[0] + x1,
                   ln2g_ref[0], ln2b_ref[0])
    x_sc[...] = x2                                                 # persists to next layer

    # --- last layer: pooler (tanh on [CLS]) + classifier on CLS row only ----
    @pl.when(l == pl.num_programs(1) - 1)
    def _head():
        cls = x2[0:1, :]                                           # (1, H) [CLS] row
        pooled = jnp.tanh(matmul(cls, wp_ref[...]) + bp_ref[...])
        lg = matmul(pooled, wc_ref[...]) + bc_ref[...]             # (1, LANE)
        logits_ref[0] = jnp.broadcast_to(lg, logits_ref.shape[1:])


# --------------------------- parameter init ---------------------------------
def init_params(key, cfg):
    H, I, L = cfg["hidden"], cfg["intermediate"], cfg["num_layers"]
    nH, dh = cfg["num_heads"], cfg["head_dim"]
    NL, LANE = cfg["num_labels"], cfg["lane_pad"]
    bf = jnp.bfloat16

    def normal(k, shape):
        return 0.02 * jax.random.normal(k, shape, dtype=jnp.float32)

    ks = iter(jax.random.split(key, 16))
    wc = normal(next(ks), (H, NL))
    # Matmul weights are stored bf16 at rest (halves HBM->VMEM DMA + VMEM footprint;
    # numerically identical to casting inside the kernel). QKV / attention-output
    # weights are stored head-major -- a checkpoint loader would do this permutation
    # once at load time, outside the kernel.
    return dict(
        word_emb=normal(next(ks), (cfg["vocab_size"], H)),
        pos_emb=normal(next(ks), (cfg["max_position"], H)),
        type_emb=normal(next(ks), (cfg["type_vocab"], H)),
        emb_ln_g=jnp.ones((1, H), jnp.float32),
        emb_ln_b=jnp.zeros((1, H), jnp.float32),
        wqkv=normal(next(ks), (L, nH, H, 3 * dh)).astype(bf),   # per-head fused q|k|v
        bqkv=jnp.zeros((L, nH, 1, 3 * dh), jnp.float32),
        wo=normal(next(ks), (L, nH, dh, H)).astype(bf),         # per-head output proj
        bo=jnp.zeros((L, 1, H), jnp.float32),
        ln1_g=jnp.ones((L, 1, H), jnp.float32),
        ln1_b=jnp.zeros((L, 1, H), jnp.float32),
        w1=normal(next(ks), (L, H, I)).astype(bf),
        b1=jnp.zeros((L, 1, I), jnp.float32),
        w2=normal(next(ks), (L, I, H)).astype(bf),
        b2=jnp.zeros((L, 1, H), jnp.float32),
        ln2_g=jnp.ones((L, 1, H), jnp.float32),
        ln2_b=jnp.zeros((L, 1, H), jnp.float32),
        wp=normal(next(ks), (H, H)).astype(bf),
        bp=jnp.zeros((1, H), jnp.float32),
        # classifier head zero-padded to 128 output lanes (lane-dense stores)
        wc_pad=jnp.zeros((H, LANE), jnp.float32).at[:, :NL].set(wc).astype(bf),
        bc_pad=jnp.zeros((1, LANE), jnp.float32),
    )


# ------------------------------ forward -------------------------------------
def classifier_forward(params, input_ids, attention_mask, cfg=CFG):
    B, S = input_ids.shape
    H, nH, dh = cfg["hidden"], cfg["num_heads"], cfg["head_dim"]
    L, I = cfg["num_layers"], cfg["intermediate"]
    NL, LANE = cfg["num_labels"], cfg["lane_pad"]
    scale = 1.0 / (dh ** 0.5)

    # --- embedding gather (layout glue, stays in XLA) ------------------------
    we = jnp.take(params["word_emb"], input_ids, axis=0)           # (B, S, H)
    pe = params["pos_emb"][:S]                                     # (S, H)
    te = params["type_emb"][0]                                     # (H,) token_type_ids = 0
    emb = we + pe[None, :, :] + te[None, None, :]                  # (B, S, H) f32
    # TODO(synk): dropout omitted (eval-mode forward); token_type_ids fixed to 0.

    # HF-style extended attention mask: (1 - mask) * -10000, added to key scores
    add_mask = ((1.0 - attention_mask.astype(jnp.float32)) * -10000.0).reshape(B, 1, S)

    kernel = functools.partial(_bert_kernel, S=S, nH=nH, dh=dh,
                               eps=cfg["ln_eps"], scale=scale)

    seq3 = lambda b, l: (b, 0, 0)          # per-sequence activation blocks
    lyr3 = lambda b, l: (l, 0, 0)          # per-layer 3-D weight blocks
    lyr4 = lambda b, l: (l, 0, 0, 0)       # per-layer 4-D (head-major) weight blocks
    cst2 = lambda b, l: (0, 0)             # shared 2-D params (loaded once)

    probs, logits_pad = pl.pallas_call(
        kernel,
        out_shape=(
            jax.ShapeDtypeStruct((L, B, nH, S, S), jnp.float32),   # HF attentions layout
            jax.ShapeDtypeStruct((B, 8, LANE), jnp.float32),       # lane-dense CLS logits
        ),
        grid=(B, L),                                               # batch parallel, layers inner
        in_specs=[
            pl.BlockSpec((1, S, H), seq3),               # emb
            pl.BlockSpec((1, 1, S), seq3),               # additive mask
            pl.BlockSpec((1, H), cst2),                  # emb_ln_g
            pl.BlockSpec((1, H), cst2),                  # emb_ln_b
            pl.BlockSpec((1, nH, H, 3 * dh), lyr4),      # wqkv (bf16, head-major)
            pl.BlockSpec((1, nH, 1, 3 * dh), lyr4),      # bqkv
            pl.BlockSpec((1, nH, dh, H), lyr4),          # wo   (bf16, head-major)
            pl.BlockSpec((1, 1, H), lyr3),               # bo
            pl.BlockSpec((1, 1, H), lyr3),               # ln1_g
            pl.BlockSpec((1, 1, H), lyr3),               # ln1_b
            pl.BlockSpec((1, H, I), lyr3),               # w1 (bf16)
            pl.BlockSpec((1, 1, I), lyr3),               # b1
            pl.BlockSpec((1, I, H), lyr3),               # w2 (bf16)
            pl.BlockSpec((1, 1, H), lyr3),               # b2
            pl.BlockSpec((1, 1, H), lyr3),               # ln2_g
            pl.BlockSpec((1, 1, H), lyr3),               # ln2_b
            pl.BlockSpec((H, H), cst2),                  # wp (bf16, pooler)
            pl.BlockSpec((1, H), cst2),                  # bp
            pl.BlockSpec((H, LANE), cst2),               # wc (bf16, padded)
            pl.BlockSpec((1, LANE), cst2),               # bc (padded)
        ],
        out_specs=(
            pl.BlockSpec((1, 1, nH, S, S), lambda b, l: (l, b, 0, 0, 0)),
            pl.BlockSpec((1, 8, LANE), seq3),            # resident across layers per tile
        ),
        scratch_shapes=[pltpu.VMEM((S, H), jnp.float32)],          # per-tile hidden state
        compiler_params=pltpu.CompilerParams(
            dimension_semantics=("parallel", "arbitrary"),         # batch across cores
            vmem_limit_bytes=32 * 1024 * 1024),                    # valid on v7x (64 MiB) too
    )(emb, add_mask, params["emb_ln_g"], params["emb_ln_b"],
      params["wqkv"], params["bqkv"], params["wo"], params["bo"],
      params["ln1_g"], params["ln1_b"], params["w1"], params["b1"],
      params["w2"], params["b2"], params["ln2_g"], params["ln2_b"],
      params["wp"], params["bp"], params["wc_pad"], params["bc_pad"])

    # tiny layout glue on kernel outputs (no transpose pass anymore)
    logits = logits_pad[:, 0, :NL]                                 # (B, num_labels)
    attentions = tuple(probs[i] for i in range(L))                 # each (B, nH, S, S)
    return logits, attentions


# -------------------------------- main ---------------------------------------
if __name__ == "__main__":
    key = jax.random.PRNGKey(0)
    kp, kid = jax.random.split(key)

    params = init_params(kp, CFG)

    B, S = 2, 8
    input_ids = jax.random.randint(kid, (B, S), 0, CFG["vocab_size"], dtype=jnp.int32)
    attention_mask = jnp.array([[1, 1, 1, 1, 1, 1, 0, 0],
                                [1, 1, 1, 1, 0, 0, 0, 0]], dtype=jnp.int32)

    logits, attentions = jax.jit(classifier_forward)(params, input_ids, attention_mask)
    jax.block_until_ready(logits)
    jax.block_until_ready(attentions)

    assert logits.shape == (B, CFG["num_labels"])
    assert len(attentions) == CFG["num_layers"]
    assert attentions[-1].shape == (B, CFG["num_heads"], S, S)
    # attention rows are exact probability distributions now
    row_sums = jnp.sum(attentions[-1], axis=-1)
    assert jnp.allclose(row_sums, 1.0, atol=1e-5)
    assert bool(jnp.all(jnp.isfinite(logits)))

    print("KERNEL_OK")
</pallas_src>

<mosaic_0001>
module attributes {stable_mosaic.version = 11 : i64} {
  func.func @_bert_kernel(%arg0: i32, %arg1: i32, %arg2: memref<1x8x32xf32, #tpu.memory_space<vmem>>, %arg3: memref<1x1x8xf32, #tpu.memory_space<vmem>>, %arg4: memref<1x32xf32, #tpu.memory_space<vmem>>, %arg5: memref<1x32xf32, #tpu.memory_space<vmem>>, %arg6: memref<1x2x32x48xbf16, #tpu.memory_space<vmem>>, %arg7: memref<1x2x1x48xf32, #tpu.memory_space<vmem>>, %arg8: memref<1x2x16x32xbf16, #tpu.memory_space<vmem>>, %arg9: memref<1x1x32xf32, #tpu.memory_space<vmem>>, %arg10: memref<1x1x32xf32, #tpu.memory_space<vmem>>, %arg11: memref<1x1x32xf32, #tpu.memory_space<vmem>>, %arg12: memref<1x32x64xbf16, #tpu.memory_space<vmem>>, %arg13: memref<1x1x64xf32, #tpu.memory_space<vmem>>, %arg14: memref<1x64x32xbf16, #tpu.memory_space<vmem>>, %arg15: memref<1x1x32xf32, #tpu.memory_space<vmem>>, %arg16: memref<1x1x32xf32, #tpu.memory_space<vmem>>, %arg17: memref<1x1x32xf32, #tpu.memory_space<vmem>>, %arg18: memref<32x32xbf16, #tpu.memory_space<vmem>>, %arg19: memref<1x32xf32, #tpu.memory_space<vmem>>, %arg20: memref<32x128xbf16, #tpu.memory_space<vmem>>, %arg21: memref<1x128xf32, #tpu.memory_space<vmem>>, %arg22: memref<1x1x2x8x8xf32, #tpu.memory_space<vmem>>, %arg23: memref<1x8x128xf32, #tpu.memory_space<vmem>>, %arg24: memref<8x32xf32, #tpu.memory_space<vmem>>) attributes {dimension_semantics = [#tpu.dimension_semantics<parallel>, #tpu.dimension_semantics<arbitrary>], iteration_bounds = array<i64: 2, 2>, scalar_prefetch = 0 : i64, scratch_operands = 1 : i64, tpu.core_type = #tpu.core_type<tc>, window_params = [{transform_indices = @transform_0, window_bounds = array<i64: 1, 8, 32>}, {transform_indices = @transform_1, window_bounds = array<i64: 1, 1, 8>}, {pipeline_mode = #tpu.pipeline_mode<synchronous>, transform_indices = @transform_2, window_bounds = array<i64: 1, 32>}, {pipeline_mode = #tpu.pipeline_mode<synchronous>, transform_indices = @transform_3, window_bounds = array<i64: 1, 32>}, {transform_indices = @transform_4, window_bounds = array<i64: 1, 2, 32, 48>}, {transform_indices = @transform_5, window_bounds = array<i64: 1, 2, 1, 48>}, {transform_indices = @transform_6, window_bounds = array<i64: 1, 2, 16, 32>}, {transform_indices = @transform_7, window_bounds = array<i64: 1, 1, 32>}, {transform_indices = @transform_8, window_bounds = array<i64: 1, 1, 32>}, {transform_indices = @transform_9, window_bounds = array<i64: 1, 1, 32>}, {transform_indices = @transform_10, window_bounds = array<i64: 1, 32, 64>}, {transform_indices = @transform_11, window_bounds = array<i64: 1, 1, 64>}, {transform_indices = @transform_12, window_bounds = array<i64: 1, 64, 32>}, {transform_indices = @transform_13, window_bounds = array<i64: 1, 1, 32>}, {transform_indices = @transform_14, window_bounds = array<i64: 1, 1, 32>}, {transform_indices = @transform_15, window_bounds = array<i64: 1, 1, 32>}, {pipeline_mode = #tpu.pipeline_mode<synchronous>, transform_indices = @transform_16, window_bounds = array<i64: 32, 32>}, {pipeline_mode = #tpu.pipeline_mode<synchronous>, transform_indices = @transform_17, window_bounds = array<i64: 1, 32>}, {pipeline_mode = #tpu.pipeline_mode<synchronous>, transform_indices = @transform_18, window_bounds = array<i64: 32, 128>}, {pipeline_mode = #tpu.pipeline_mode<synchronous>, transform_indices = @transform_19, window_bounds = array<i64: 1, 128>}, {transform_indices = @transform_20, window_bounds = array<i64: 1, 1, 2, 8, 8>}, {transform_indices = @transform_21, window_bounds = array<i64: 1, 8, 128>}]} {
    %c0_i32 = arith.constant 0 : i32
    %0 = arith.cmpi eq, %arg1, %c0_i32 : i32
    %1 = arith.extui %0 : i1 to i32
    %c0_i32_0 = arith.constant 0 : i32
    %2 = arith.cmpi ne, %1, %c0_i32_0 : i32
    scf.if %2 {
      %c0_86 = arith.constant 0 : index
      %c0_87 = arith.constant 0 : index
      %c0_88 = arith.constant 0 : index
      %161 = vector.load %arg2[%c0_86, %c0_87, %c0_88] : memref<1x8x32xf32, #tpu.memory_space<vmem>>, vector<1x8x32xf32>
      %162 = vector.shape_cast %161 : vector<1x8x32xf32> to vector<8x32xf32>
      %c0_89 = arith.constant 0 : index
      %c0_90 = arith.constant 0 : index
      %163 = vector.load %arg4[%c0_89, %c0_90] : memref<1x32xf32, #tpu.memory_space<vmem>>, vector<1x32xf32>
      %c0_91 = arith.constant 0 : index
      %c0_92 = arith.constant 0 : index
      %164 = vector.load %arg5[%c0_91, %c0_92] : memref<1x32xf32, #tpu.memory_space<vmem>>, vector<1x32xf32>
      %cst_93 = arith.constant dense<0.000000e+00> : vector<8xf32>
      %165 = vector.multi_reduction <add>, %162, %cst_93 [1] : vector<8x32xf32> to vector<8xf32>
      %166 = vector.shape_cast %165 : vector<8xf32> to vector<8x1xf32>
      %cst_94 = arith.constant 3.200000e+01 : f32
      %167 = vector.broadcast %cst_94 : f32 to vector<8x1xf32>
      %168 = arith.divf %166, %167 : vector<8x1xf32>
      %169 = vector.broadcast %168 : vector<8x1xf32> to vector<8x32xf32>
      %170 = arith.subf %162, %169 : vector<8x32xf32>
      %171 = arith.mulf %170, %170 : vector<8x32xf32>
      %cst_95 = arith.constant dense<0.000000e+00> : vector<8xf32>
      %172 = vector.multi_reduction <add>, %171, %cst_95 [1] : vector<8x32xf32> to vector<8xf32>
      %173 = vector.shape_cast %172 : vector<8xf32> to vector<8x1xf32>
      %cst_96 = arith.constant 3.200000e+01 : f32
      %174 = vector.broadcast %cst_96 : f32 to vector<8x1xf32>
      %175 = arith.divf %173, %174 : vector<8x1xf32>
      %cst_97 = arith.constant 9.99999996E-13 : f32
      %176 = vector.broadcast %cst_97 : f32 to vector<8x1xf32>
      %177 = arith.addf %175, %176 : vector<8x1xf32>
      %178 = math.rsqrt %177 : vector<8x1xf32>
      %179 = vector.broadcast %178 : vector<8x1xf32> to vector<8x32xf32>
      %180 = arith.mulf %170, %179 : vector<8x32xf32>
      %181 = vector.broadcast %163 : vector<1x32xf32> to vector<8x32xf32>
      %182 = arith.mulf %180, %181 : vector<8x32xf32>
      %183 = vector.broadcast %164 : vector<1x32xf32> to vector<8x32xf32>
      %184 = arith.addf %182, %183 : vector<8x32xf32>
      %c0_98 = arith.constant 0 : index
      %c0_99 = arith.constant 0 : index
      %185 = vector.load %arg24[%c0_98, %c0_99] : memref<8x32xf32, #tpu.memory_space<vmem>>, vector<8x32xf32>
      tpu.vector_store %arg24[%c0_98, %c0_99], %184 {strides = array<i32>} : memref<8x32xf32, #tpu.memory_space<vmem>>, vector<8x32xf32>,
    } else {
    }
    %c0 = arith.constant 0 : index
    %c0_1 = arith.constant 0 : index
    %3 = vector.load %arg24[%c0, %c0_1] : memref<8x32xf32, #tpu.memory_space<vmem>>, vector<8x32xf32>
    %c0_2 = arith.constant 0 : index
    %c0_3 = arith.constant 0 : index
    %c0_4 = arith.constant 0 : index
    %4 = vector.load %arg3[%c0_2, %c0_3, %c0_4] : memref<1x1x8xf32, #tpu.memory_space<vmem>>, vector<1x1x8xf32>
    %5 = vector.shape_cast %4 : vector<1x1x8xf32> to vector<1x8xf32>
    %6 = arith.truncf %3 : vector<8x32xf32> to vector<8x32xbf16>
    %7 = vector.shape_cast %6 : vector<8x32xbf16> to vector<1x8x32xbf16>
    %8 = vector.broadcast %7 : vector<1x8x32xbf16> to vector<2x8x32xbf16>
    %c0_5 = arith.constant 0 : index
    %c0_6 = arith.constant 0 : index
    %c0_7 = arith.constant 0 : index
    %c0_8 = arith.constant 0 : index
    %9 = vector.load %arg6[%c0_5, %c0_6, %c0_7, %c0_8] : memref<1x2x32x48xbf16, #tpu.memory_space<vmem>>, vector<1x2x32x48xbf16>
    %10 = vector.shape_cast %9 : vector<1x2x32x48xbf16> to vector<2x32x48xbf16>
    %cst = arith.constant dense<0.000000e+00> : vector<2x8x48xf32>
    %11 = tpu.matmul %8, %10, %cst {dimension_numbers = #tpu.dot_dimension_numbers<[2], [1], [1], [2], [0, 0, 0, 1, 1, 2], [0], [0]>} : vector<2x8x32xbf16>, vector<2x32x48xbf16>, vector<2x8x48xf32> -> vector<2x8x48xf32>
    %c0_9 = arith.constant 0 : index
    %c0_10 = arith.constant 0 : index
    %c0_11 = arith.constant 0 : index
    %c0_12 = arith.constant 0 : index
    %12 = vector.load %arg7[%c0_9, %c0_10, %c0_11, %c0_12] : memref<1x2x1x48xf32, #tpu.memory_space<vmem>>, vector<1x2x1x48xf32>
    %13 = vector.shape_cast %12 : vector<1x2x1x48xf32> to vector<2x1x48xf32>
    %14 = vector.broadcast %13 : vector<2x1x48xf32> to vector<2x8x48xf32>
    %15 = arith.addf %11, %14 : vector<2x8x48xf32>
    %16 = vector.extract_strided_slice %15 {offsets = [0, 0, 0], sizes = [2, 8, 16], strides = [1, 1, 1]} : vector<2x8x48xf32> to vector<2x8x16xf32>
    %17 = arith.truncf %16 : vector<2x8x16xf32> to vector<2x8x16xbf16>
    %18 = vector.extract_strided_slice %15 {offsets = [0, 0, 16], sizes = [2, 8, 16], strides = [1, 1, 1]} : vector<2x8x48xf32> to vector<2x8x16xf32>
    %19 = arith.truncf %18 : vector<2x8x16xf32> to vector<2x8x16xbf16>
    %20 = vector.extract_strided_slice %15 {offsets = [0, 0, 32], sizes = [2, 8, 16], strides = [1, 1, 1]} : vector<2x8x48xf32> to vector<2x8x16xf32>
    %21 = arith.truncf %20 : vector<2x8x16xf32> to vector<2x8x16xbf16>
    %cst_13 = arith.constant dense<0.000000e+00> : vector<2x8x8xf32>
    %22 = tpu.matmul %17, %19, %cst_13 {dimension_numbers = #tpu.dot_dimension_numbers<[2], [2], [1], [1], [0, 0, 0, 1, 1, 1], [0], [0]>} : vector<2x8x16xbf16>, vector<2x8x16xbf16>, vector<2x8x8xf32> -> vector<2x8x8xf32>
    %cst_14 = arith.constant 2.500000e-01 : f32
    %23 = vector.broadcast %cst_14 : f32 to vector<2x8x8xf32>
    %24 = arith.mulf %22, %23 : vector<2x8x8xf32>
    %25 = vector.shape_cast %5 : vector<1x8xf32> to vector<1x1x8xf32>
    %26 = vector.broadcast %25 : vector<1x1x8xf32> to vector<2x8x8xf32>
    %27 = arith.addf %24, %26 : vector<2x8x8xf32>
    %cst_15 = arith.constant dense<0xFF800000> : vector<2x8xf32>
    %28 = vector.multi_reduction <maximumf>, %27, %cst_15 [2] : vector<2x8x8xf32> to vector<2x8xf32>
    %29 = vector.shape_cast %28 : vector<2x8xf32> to vector<2x8x1xf32>
    %30 = vector.broadcast %29 : vector<2x8x1xf32> to vector<2x8x8xf32>
    %31 = arith.subf %27, %30 : vector<2x8x8xf32>
    %32 = math.exp %31 : vector<2x8x8xf32>
    %cst_16 = arith.constant dense<0.000000e+00> : vector<2x8xf32>
    %33 = vector.multi_reduction <add>, %32, %cst_16 [2] : vector<2x8x8xf32> to vector<2x8xf32>
    %34 = vector.shape_cast %33 : vector<2x8xf32> to vector<2x8x1xf32>
    %35 = vector.broadcast %34 : vector<2x8x1xf32> to vector<2x8x8xf32>
    %36 = arith.divf %32, %35 : vector<2x8x8xf32>
    %c0_17 = arith.constant 0 : index
    %c0_18 = arith.constant 0 : index
    %c0_19 = arith.constant 0 : index
    %c0_20 = arith.constant 0 : index
    %c0_21 = arith.constant 0 : index
    %37 = vector.load %arg22[%c0_17, %c0_18, %c0_19, %c0_20, %c0_21] : memref<1x1x2x8x8xf32, #tpu.memory_space<vmem>>, vector<1x1x2x8x8xf32>
    %38 = vector.shape_cast %37 : vector<1x1x2x8x8xf32> to vector<2x8x8xf32>
    %39 = vector.shape_cast %36 : vector<2x8x8xf32> to vector<1x1x2x8x8xf32>
    tpu.vector_store %arg22[%c0_17, %c0_18, %c0_19, %c0_20, %c0_21], %39 {strides = array<i32>} : memref<1x1x2x8x8xf32, #tpu.memory_space<vmem>>, vector<1x1x2x8x8xf32>,
    %40 = arith.truncf %36 : vector<2x8x8xf32> to vector<2x8x8xbf16>
    %cst_22 = arith.constant dense<0.000000e+00> : vector<2x8x16xf32>
    %41 = tpu.matmul %40, %21, %cst_22 {dimension_numbers = #tpu.dot_dimension_numbers<[2], [1], [1], [2], [0, 0, 0, 1, 1, 2], [0], [0]>} : vector<2x8x8xbf16>, vector<2x8x16xbf16>, vector<2x8x16xf32> -> vector<2x8x16xf32>
    %c0_23 = arith.constant 0 : index
    %c0_24 = arith.constant 0 : index
    %c0_25 = arith.constant 0 : index
    %c0_26 = arith.constant 0 : index
    %42 = vector.load %arg8[%c0_23, %c0_24, %c0_25, %c0_26] : memref<1x2x16x32xbf16, #tpu.memory_space<vmem>>, vector<1x2x16x32xbf16>
    %43 = vector.shape_cast %42 : vector<1x2x16x32xbf16> to vector<2x16x32xbf16>
    %44 = arith.truncf %41 : vector<2x8x16xf32> to vector<2x8x16xbf16>
    %cst_27 = arith.constant dense<0.000000e+00> : vector<2x8x32xf32>
    %45 = tpu.matmul %44, %43, %cst_27 {dimension_numbers = #tpu.dot_dimension_numbers<[2], [1], [1], [2], [0, 0, 0, 1, 1, 2], [0], [0]>} : vector<2x8x16xbf16>, vector<2x16x32xbf16>, vector<2x8x32xf32> -> vector<2x8x32xf32>
    %cst_28 = arith.constant dense<0.000000e+00> : vector<8x32xf32>
    %46 = vector.multi_reduction <add>, %45, %cst_28 [0] : vector<2x8x32xf32> to vector<8x32xf32>
    %c0_29 = arith.constant 0 : index
    %c0_30 = arith.constant 0 : index
    %c0_31 = arith.constant 0 : index
    %47 = vector.load %arg9[%c0_29, %c0_30, %c0_31] : memref<1x1x32xf32, #tpu.memory_space<vmem>>, vector<1x1x32xf32>
    %48 = vector.shape_cast %47 : vector<1x1x32xf32> to vector<1x32xf32>
    %49 = vector.broadcast %48 : vector<1x32xf32> to vector<8x32xf32>
    %50 = arith.addf %46, %49 : vector<8x32xf32>
    %51 = arith.addf %50, %3 : vector<8x32xf32>
    %c0_32 = arith.constant 0 : index
    %c0_33 = arith.constant 0 : index
    %c0_34 = arith.constant 0 : index
    %52 = vector.load %arg10[%c0_32, %c0_33, %c0_34] : memref<1x1x32xf32, #tpu.memory_space<vmem>>, vector<1x1x32xf32>
    %53 = vector.shape_cast %52 : vector<1x1x32xf32> to vector<1x32xf32>
    %c0_35 = arith.constant 0 : index
    %c0_36 = arith.constant 0 : index
    %c0_37 = arith.constant 0 : index
    %54 = vector.load %arg11[%c0_35, %c0_36, %c0_37] : memref<1x1x32xf32, #tpu.memory_space<vmem>>, vector<1x1x32xf32>
    %55 = vector.shape_cast %54 : vector<1x1x32xf32> to vector<1x32xf32>
    %cst_38 = arith.constant dense<0.000000e+00> : vector<8xf32>
    %56 = vector.multi_reduction <add>, %51, %cst_38 [1] : vector<8x32xf32> to vector<8xf32>
    %57 = vector.shape_cast %56 : vector<8xf32> to vector<8x1xf32>
    %cst_39 = arith.constant 3.200000e+01 : f32
    %58 = vector.broadcast %cst_39 : f32 to vector<8x1xf32>
    %59 = arith.divf %57, %58 : vector<8x1xf32>
    %60 = vector.broadcast %59 : vector<8x1xf32> to vector<8x32xf32>
    %61 = arith.subf %51, %60 : vector<8x32xf32>
    %62 = arith.mulf %61, %61 : vector<8x32xf32>
    %cst_40 = arith.constant dense<0.000000e+00> : vector<8xf32>
    %63 = vector.multi_reduction <add>, %62, %cst_40 [1] : vector<8x32xf32> to vector<8xf32>
    %64 = vector.shape_cast %63 : vector<8xf32> to vector<8x1xf32>
    %cst_41 = arith.constant 3.200000e+01 : f32
    %65 = vector.broadcast %cst_41 : f32 to vector<8x1xf32>
    %66 = arith.divf %64, %65 : vector<8x1xf32>
    %cst_42 = arith.constant 9.99999996E-13 : f32
    %67 = vector.broadcast %cst_42 : f32 to vector<8x1xf32>
    %68 = arith.addf %66, %67 : vector<8x1xf32>
    %69 = math.rsqrt %68 : vector<8x1xf32>
    %70 = vector.broadcast %69 : vector<8x1xf32> to vector<8x32xf32>
    %71 = arith.mulf %61, %70 : vector<8x32xf32>
    %72 = vector.broadcast %53 : vector<1x32xf32> to vector<8x32xf32>
    %73 = arith.mulf %71, %72 : vector<8x32xf32>
    %74 = vector.broadcast %55 : vector<1x32xf32> to vector<8x32xf32>
    %75 = arith.addf %73, %74 : vector<8x32xf32>
    %c0_43 = arith.constant 0 : index
    %c0_44 = arith.constant 0 : index
    %c0_45 = arith.constant 0 : index
    %76 = vector.load %arg12[%c0_43, %c0_44, %c0_45] : memref<1x32x64xbf16, #tpu.memory_space<vmem>>, vector<1x32x64xbf16>
    %77 = vector.shape_cast %76 : vector<1x32x64xbf16> to vector<32x64xbf16>
    %78 = arith.truncf %75 : vector<8x32xf32> to vector<8x32xbf16>
    %cst_46 = arith.constant dense<0.000000e+00> : vector<8x64xf32>
    %79 = tpu.matmul %78, %77, %cst_46 {dimension_numbers = #tpu.dot_dimension_numbers<[1], [0], [0], [1], [0, 0, 1, 1], [], []>} : vector<8x32xbf16>, vector<32x64xbf16>, vector<8x64xf32> -> vector<8x64xf32>
    %c0_47 = arith.constant 0 : index
    %c0_48 = arith.constant 0 : index
    %c0_49 = arith.constant 0 : index
    %80 = vector.load %arg13[%c0_47, %c0_48, %c0_49] : memref<1x1x64xf32, #tpu.memory_space<vmem>>, vector<1x1x64xf32>
    %81 = vector.shape_cast %80 : vector<1x1x64xf32> to vector<1x64xf32>
    %82 = vector.broadcast %81 : vector<1x64xf32> to vector<8x64xf32>
    %83 = arith.addf %79, %82 : vector<8x64xf32>
    %cst_50 = arith.constant 5.000000e-01 : f32
    %84 = vector.broadcast %cst_50 : f32 to vector<8x64xf32>
    %85 = arith.mulf %84, %83 : vector<8x64xf32>
    %cst_51 = arith.constant 0.707106769 : f32
    %86 = vector.broadcast %cst_51 : f32 to vector<8x64xf32>
    %87 = arith.mulf %83, %86 : vector<8x64xf32>
    %88 = math.absf %87 : vector<8x64xf32>
    %cst_52 = arith.constant 0.327591091 : f32
    %89 = vector.broadcast %cst_52 : f32 to vector<8x64xf32>
    %90 = arith.mulf %89, %88 : vector<8x64xf32>
    %cst_53 = arith.constant 1.000000e+00 : f32
    %91 = vector.broadcast %cst_53 : f32 to vector<8x64xf32>
    %92 = arith.addf %91, %90 : vector<8x64xf32>
    %cst_54 = arith.constant 1.000000e+00 : f32
    %93 = vector.broadcast %cst_54 : f32 to vector<8x64xf32>
    %94 = arith.divf %93, %92 : vector<8x64xf32>
    %cst_55 = arith.constant 1.06140542 : f32
    %95 = vector.broadcast %cst_55 : f32 to vector<8x64xf32>
    %96 = arith.mulf %94, %95 : vector<8x64xf32>
    %cst_56 = arith.constant -1.45315206 : f32
    %97 = vector.broadcast %cst_56 : f32 to vector<8x64xf32>
    %98 = arith.addf %97, %96 : vector<8x64xf32>
    %99 = arith.mulf %94, %98 : vector<8x64xf32>
    %cst_57 = arith.constant 1.42141378 : f32
    %100 = vector.broadcast %cst_57 : f32 to vector<8x64xf32>
    %101 = arith.addf %100, %99 : vector<8x64xf32>
    %102 = arith.mulf %94, %101 : vector<8x64xf32>
    %cst_58 = arith.constant -0.284496725 : f32
    %103 = vector.broadcast %cst_58 : f32 to vector<8x64xf32>
    %104 = arith.addf %103, %102 : vector<8x64xf32>
    %105 = arith.mulf %94, %104 : vector<8x64xf32>
    %cst_59 = arith.constant 0.254829586 : f32
    %106 = vector.broadcast %cst_59 : f32 to vector<8x64xf32>
    %107 = arith.addf %106, %105 : vector<8x64xf32>
    %108 = arith.mulf %94, %107 : vector<8x64xf32>
    %109 = arith.mulf %88, %88 : vector<8x64xf32>
    %cst_60 = arith.constant 0.000000e+00 : f32
    %110 = vector.broadcast %cst_60 : f32 to vector<8x64xf32>
    %111 = arith.subf %110, %109 : vector<8x64xf32>
    %112 = math.exp %111 : vector<8x64xf32>
    %113 = arith.mulf %108, %112 : vector<8x64xf32>
    %cst_61 = arith.constant 1.000000e+00 : f32
    %114 = vector.broadcast %cst_61 : f32 to vector<8x64xf32>
    %115 = arith.subf %114, %113 : vector<8x64xf32>
    %cst_62 = arith.constant 0.000000e+00 : f32
    %116 = vector.broadcast %cst_62 : f32 to vector<8x64xf32>
    %117 = arith.cmpf oge, %87, %116 : vector<8x64xf32>
    %cst_63 = arith.constant 0.000000e+00 : f32
    %118 = vector.broadcast %cst_63 : f32 to vector<8x64xf32>
    %119 = arith.subf %118, %115 : vector<8x64xf32>
    %120 = arith.select %117, %115, %119 : vector<8x64xi1>, vector<8x64xf32>
    %cst_64 = arith.constant 1.000000e+00 : f32
    %121 = vector.broadcast %cst_64 : f32 to vector<8x64xf32>
    %122 = arith.addf %121, %120 : vector<8x64xf32>
    %123 = arith.mulf %85, %122 : vector<8x64xf32>
    %c0_65 = arith.constant 0 : index
    %c0_66 = arith.constant 0 : index
    %c0_67 = arith.constant 0 : index
    %124 = vector.load %arg14[%c0_65, %c0_66, %c0_67] : memref<1x64x32xbf16, #tpu.memory_space<vmem>>, vector<1x64x32xbf16>
    %125 = vector.shape_cast %124 : vector<1x64x32xbf16> to vector<64x32xbf16>
    %126 = arith.truncf %123 : vector<8x64xf32> to vector<8x64xbf16>
    %cst_68 = arith.constant dense<0.000000e+00> : vector<8x32xf32>
    %127 = tpu.matmul %126, %125, %cst_68 {dimension_numbers = #tpu.dot_dimension_numbers<[1], [0], [0], [1], [0, 0, 1, 1], [], []>} : vector<8x64xbf16>, vector<64x32xbf16>, vector<8x32xf32> -> vector<8x32xf32>
    %c0_69 = arith.constant 0 : index
    %c0_70 = arith.constant 0 : index
    %c0_71 = arith.constant 0 : index
    %128 = vector.load %arg15[%c0_69, %c0_70, %c0_71] : memref<1x1x32xf32, #tpu.memory_space<vmem>>, vector<1x1x32xf32>
    %129 = vector.shape_cast %128 : vector<1x1x32xf32> to vector<1x32xf32>
    %130 = vector.broadcast %129 : vector<1x32xf32> to vector<8x32xf32>
    %131 = arith.addf %127, %130 : vector<8x32xf32>
    %132 = arith.addf %131, %75 : vector<8x32xf32>
    %c0_72 = arith.constant 0 : index
    %c0_73 = arith.constant 0 : index
    %c0_74 = arith.constant 0 : index
    %133 = vector.load %arg16[%c0_72, %c0_73, %c0_74] : memref<1x1x32xf32, #tpu.memory_space<vmem>>, vector<1x1x32xf32>
    %134 = vector.shape_cast %133 : vector<1x1x32xf32> to vector<1x32xf32>
    %c0_75 = arith.constant 0 : index
    %c0_76 = arith.constant 0 : index
    %c0_77 = arith.constant 0 : index
    %135 = vector.load %arg17[%c0_75, %c0_76, %c0_77] : memref<1x1x32xf32, #tpu.memory_space<vmem>>, vector<1x1x32xf32>
    %136 = vector.shape_cast %135 : vector<1x1x32xf32> to vector<1x32xf32>
    %cst_78 = arith.constant dense<0.000000e+00> : vector<8xf32>
    %137 = vector.multi_reduction <add>, %132, %cst_78 [1] : vector<8x32xf32> to vector<8xf32>
    %138 = vector.shape_cast %137 : vector<8xf32> to vector<8x1xf32>
    %cst_79 = arith.constant 3.200000e+01 : f32
    %139 = vector.broadcast %cst_79 : f32 to vector<8x1xf32>
    %140 = arith.divf %138, %139 : vector<8x1xf32>
    %141 = vector.broadcast %140 : vector<8x1xf32> to vector<8x32xf32>
    %142 = arith.subf %132, %141 : vector<8x32xf32>
    %143 = arith.mulf %142, %142 : vector<8x32xf32>
    %cst_80 = arith.constant dense<0.000000e+00> : vector<8xf32>
    %144 = vector.multi_reduction <add>, %143, %cst_80 [1] : vector<8x32xf32> to vector<8xf32>
    %145 = vector.shape_cast %144 : vector<8xf32> to vector<8x1xf32>
    %cst_81 = arith.constant 3.200000e+01 : f32
    %146 = vector.broadcast %cst_81 : f32 to vector<8x1xf32>
    %147 = arith.divf %145, %146 : vector<8x1xf32>
    %cst_82 = arith.constant 9.99999996E-13 : f32
    %148 = vector.broadcast %cst_82 : f32 to vector<8x1xf32>
    %149 = arith.addf %147, %148 : vector<8x1xf32>
    %150 = math.rsqrt %149 : vector<8x1xf32>
    %151 = vector.broadcast %150 : vector<8x1xf32> to vector<8x32xf32>
    %152 = arith.mulf %142, %151 : vector<8x32xf32>
    %153 = vector.broadcast %134 : vector<1x32xf32> to vector<8x32xf32>
    %154 = arith.mulf %152, %153 : vector<8x32xf32>
    %155 = vector.broadcast %136 : vector<1x32xf32> to vector<8x32xf32>
    %156 = arith.addf %154, %155 : vector<8x32xf32>
    %c0_83 = arith.constant 0 : index
    %c0_84 = arith.constant 0 : index
    %157 = vector.load %arg24[%c0_83, %c0_84] : memref<8x32xf32, #tpu.memory_space<vmem>>, vector<8x32xf32>
    tpu.vector_store %arg24[%c0_83, %c0_84], %156 {strides = array<i32>} : memref<8x32xf32, #tpu.memory_space<vmem>>, vector<8x32xf32>,
    %c1_i32 = arith.constant 1 : i32
    %158 = arith.cmpi eq, %arg1, %c1_i32 : i32
    %159 = arith.extui %158 : i1 to i32
    %c0_i32_85 = arith.constant 0 : i32
    %160 = arith.cmpi ne, %159, %c0_i32_85 : i32
    scf.if %160 {
      %161 = vector.extract_strided_slice %156 {offsets = [0, 0], sizes = [1, 32], strides = [1, 1]} : vector<8x32xf32> to vector<1x32xf32>
      %c0_86 = arith.constant 0 : index
      %c0_87 = arith.constant 0 : index
      %162 = vector.load %arg18[%c0_86, %c0_87] : memref<32x32xbf16, #tpu.memory_space<vmem>>, vector<32x32xbf16>
      %163 = arith.truncf %161 : vector<1x32xf32> to vector<1x32xbf16>
      %cst_88 = arith.constant dense<0.000000e+00> : vector<1x32xf32>
      %164 = tpu.matmul %163, %162, %cst_88 {dimension_numbers = #tpu.dot_dimension_numbers<[1], [0], [0], [1], [0, 0, 1, 1], [], []>} : vector<1x32xbf16>, vector<32x32xbf16>, vector<1x32xf32> -> vector<1x32xf32>
      %c0_89 = arith.constant 0 : index
      %c0_90 = arith.constant 0 : index
      %165 = vector.load %arg19[%c0_89, %c0_90] : memref<1x32xf32, #tpu.memory_space<vmem>>, vector<1x32xf32>
      %166 = arith.addf %164, %165 : vector<1x32xf32>
      %167 = math.tanh %166 : vector<1x32xf32>
      %c0_91 = arith.constant 0 : index
      %c0_92 = arith.constant 0 : index
      %168 = vector.load %arg20[%c0_91, %c0_92] : memref<32x128xbf16, #tpu.memory_space<vmem>>, vector<32x128xbf16>
      %169 = arith.truncf %167 : vector<1x32xf32> to vector<1x32xbf16>
      %cst_93 = arith.constant dense<0.000000e+00> : vector<1x128xf32>
      %170 = tpu.matmul %169, %168, %cst_93 {dimension_numbers = #tpu.dot_dimension_numbers<[1], [0], [0], [1], [0, 0, 1, 1], [], []>} : vector<1x32xbf16>, vector<32x128xbf16>, vector<1x128xf32> -> vector<1x128xf32>
      %c0_94 = arith.constant 0 : index
      %c0_95 = arith.constant 0 : index
      %171 = vector.load %arg21[%c0_94, %c0_95] : memref<1x128xf32, #tpu.memory_space<vmem>>, vector<1x128xf32>
      %172 = arith.addf %170, %171 : vector<1x128xf32>
      %173 = vector.shape_cast %172 : vector<1x128xf32> to vector<1x128xf32>
      %174 = vector.broadcast %173 : vector<1x128xf32> to vector<8x128xf32>
      %c0_96 = arith.constant 0 : index
      %c0_97 = arith.constant 0 : index
      %c0_98 = arith.constant 0 : index
      %175 = vector.load %arg23[%c0_96, %c0_97, %c0_98] : memref<1x8x128xf32, #tpu.memory_space<vmem>>, vector<1x8x128xf32>
      %176 = vector.shape_cast %175 : vector<1x8x128xf32> to vector<8x128xf32>
      %177 = vector.shape_cast %174 : vector<8x128xf32> to vector<1x8x128xf32>
      tpu.vector_store %arg23[%c0_96, %c0_97, %c0_98], %177 {strides = array<i32>} : memref<1x8x128xf32, #tpu.memory_space<vmem>>, vector<1x8x128xf32>,
    } else {
    }
    return
  }
  func.func @transform_0(%arg0: i32, %arg1: i32) -> (i32, i32, i32) {
    %c0_i32 = arith.constant 0 : i32
    %c0_i32_0 = arith.constant 0 : i32
    %c0_i32_1 = arith.constant 0 : i32
    return %arg0, %c0_i32, %c0_i32_0 : i32, i32, i32
  }
  func.func @transform_1(%arg0: i32, %arg1: i32) -> (i32, i32, i32) {
    %c0_i32 = arith.constant 0 : i32
    %c0_i32_0 = arith.constant 0 : i32
    %c0_i32_1 = arith.constant 0 : i32
    return %arg0, %c0_i32, %c0_i32_0 : i32, i32, i32
  }
  func.func @transform_2(%arg0: i32, %arg1: i32) -> (i32, i32) {
    %c0_i32 = arith.constant 0 : i32
    %c0_i32_0 = arith.constant 0 : i32
    %c0_i32_1 = arith.constant 0 : i32
    return %c0_i32, %c0_i32_0 : i32, i32
  }
  func.func @transform_3(%arg0: i32, %arg1: i32) -> (i32, i32) {
    %c0_i32 = arith.constant 0 : i32
    %c0_i32_0 = arith.constant 0 : i32
    %c0_i32_1 = arith.constant 0 : i32
    return %c0_i32, %c0_i32_0 : i32, i32
  }
  func.func @transform_4(%arg0: i32, %arg1: i32) -> (i32, i32, i32, i32) {
    %c0_i32 = arith.constant 0 : i32
    %c0_i32_0 = arith.constant 0 : i32
    %c0_i32_1 = arith.constant 0 : i32
    %c0_i32_2 = arith.constant 0 : i32
    return %arg1, %c0_i32, %c0_i32_0, %c0_i32_1 : i32, i32, i32, i32
  }
  func.func @transform_5(%arg0: i32, %arg1: i32) -> (i32, i32, i32, i32) {
    %c0_i32 = arith.constant 0 : i32
    %c0_i32_0 = arith.constant 0 : i32
    %c0_i32_1 = arith.constant 0 : i32
    %c0_i32_2 = arith.constant 0 : i32
    return %arg1, %c0_i32, %c0_i32_0, %c0_i32_1 : i32, i32, i32, i32
  }
  func.func @transform_6(%arg0: i32, %arg1: i32) -> (i32, i32, i32, i32) {
    %c0_i32 = arith.constant 0 : i32
    %c0_i32_0 = arith.constant 0 : i32
    %c0_i32_1 = arith.constant 0 : i32
    %c0_i32_2 = arith.constant 0 : i32
    return %arg1, %c0_i32, %c0_i32_0, %c0_i32_1 : i32, i32, i32, i32
  }
  func.func @transform_7(%arg0: i32, %arg1: i32) -> (i32, i32, i32) {
    %c0_i32 = arith.constant 0 : i32
    %c0_i32_0 = arith.constant 0 : i32
    %c0_i32_1 = arith.constant 0 : i32
    return %arg1, %c0_i32, %c0_i32_0 : i32, i32, i32
  }
  func.func @transform_8(%arg0: i32, %arg1: i32) -> (i32, i32, i32) {
    %c0_i32 = arith.constant 0 : i32
    %c0_i32_0 = arith.constant 0 : i32
    %c0_i32_1 = arith.constant 0 : i32
    return %arg1, %c0_i32, %c0_i32_0 : i32, i32, i32
  }
  func.func @transform_9(%arg0: i32, %arg1: i32) -> (i32, i32, i32) {
    %c0_i32 = arith.constant 0 : i32
    %c0_i32_0 = arith.constant 0 : i32
    %c0_i32_1 = arith.constant 0 : i32
    return %arg1, %c0_i32, %c0_i32_0 : i32, i32, i32
  }
  func.func @transform_10(%arg0: i32, %arg1: i32) -> (i32, i32, i32) {
    %c0_i32 = arith.constant 0 : i32
    %c0_i32_0 = arith.constant 0 : i32
    %c0_i32_1 = arith.constant 0 : i32
    return %arg1, %c0_i32, %c0_i32_0 : i32, i32, i32
  }
  func.func @transform_11(%arg0: i32, %arg1: i32) -> (i32, i32, i32) {
    %c0_i32 = arith.constant 0 : i32
    %c0_i32_0 = arith.constant 0 : i32
    %c0_i32_1 = arith.constant 0 : i32
    return %arg1, %c0_i32, %c0_i32_0 : i32, i32, i32
  }
  func.func @transform_12(%arg0: i32, %arg1: i32) -> (i32, i32, i32) {
    %c0_i32 = arith.constant 0 : i32
    %c0_i32_0 = arith.constant 0 : i32
    %c0_i32_1 = arith.constant 0 : i32
    return %arg1, %c0_i32, %c0_i32_0 : i32, i32, i32
  }
  func.func @transform_13(%arg0: i32, %arg1: i32) -> (i32, i32, i32) {
    %c0_i32 = arith.constant 0 : i32
    %c0_i32_0 = arith.constant 0 : i32
    %c0_i32_1 = arith.constant 0 : i32
    return %arg1, %c0_i32, %c0_i32_0 : i32, i32, i32
  }
  func.func @transform_14(%arg0: i32, %arg1: i32) -> (i32, i32, i32) {
    %c0_i32 = arith.constant 0 : i32
    %c0_i32_0 = arith.constant 0 : i32
    %c0_i32_1 = arith.constant 0 : i32
    return %arg1, %c0_i32, %c0_i32_0 : i32, i32, i32
  }
  func.func @transform_15(%arg0: i32, %arg1: i32) -> (i32, i32, i32) {
    %c0_i32 = arith.constant 0 : i32
    %c0_i32_0 = arith.constant 0 : i32
    %c0_i32_1 = arith.constant 0 : i32
    return %arg1, %c0_i32, %c0_i32_0 : i32, i32, i32
  }
  func.func @transform_16(%arg0: i32, %arg1: i32) -> (i32, i32) {
    %c0_i32 = arith.constant 0 : i32
    %c0_i32_0 = arith.constant 0 : i32
    %c0_i32_1 = arith.constant 0 : i32
    return %c0_i32, %c0_i32_0 : i32, i32
  }
  func.func @transform_17(%arg0: i32, %arg1: i32) -> (i32, i32) {
    %c0_i32 = arith.constant 0 : i32
    %c0_i32_0 = arith.constant 0 : i32
    %c0_i32_1 = arith.constant 0 : i32
    return %c0_i32, %c0_i32_0 : i32, i32
  }
  func.func @transform_18(%arg0: i32, %arg1: i32) -> (i32, i32) {
    %c0_i32 = arith.constant 0 : i32
    %c0_i32_0 = arith.constant 0 : i32
    %c0_i32_1 = arith.constant 0 : i32
    return %c0_i32, %c0_i32_0 : i32, i32
  }
  func.func @transform_19(%arg0: i32, %arg1: i32) -> (i32, i32) {
    %c0_i32 = arith.constant 0 : i32
    %c0_i32_0 = arith.constant 0 : i32
    %c0_i32_1 = arith.constant 0 : i32
    return %c0_i32, %c0_i32_0 : i32, i32
  }
  func.func @transform_20(%arg0: i32, %arg1: i32) -> (i32, i32, i32, i32, i32) {
    %c0_i32 = arith.constant 0 : i32
    %c0_i32_0 = arith.constant 0 : i32
    %c0_i32_1 = arith.constant 0 : i32
    %c0_i32_2 = arith.constant 0 : i32
    return %arg1, %arg0, %c0_i32, %c0_i32_0, %c0_i32_1 : i32, i32, i32, i32, i32
  }
  func.func @transform_21(%arg0: i32, %arg1: i32) -> (i32, i32, i32) {
    %c0_i32 = arith.constant 0 : i32
    %c0_i32_0 = arith.constant 0 : i32
    %c0_i32_1 = arith.constant 0 : i32
    return %arg0, %c0_i32, %c0_i32_0 : i32, i32, i32
  }
}

</mosaic_0001>

<bundles_post_ra>
// kernel: classifier_forward.1
= control target key start
LH: loop header
LB: loop body
LE: loop exit
PB: predicated region body
PF: predicated region fallthrough
CT: control target
= control target key end

     0   :  { %s2465_s25 = smov 0   ;;  %s2467_s26 = smov 0   ;;  %s2747_s0 = inlined_call_operand.vmem [shape: f32[2,8,32], index: 0, kind: input, shape index: {}]   ;;  %s2748_s1 = inlined_call_operand.vmem [shape: f32[2,1,8], index: 1, kind: input, shape index: {}]   ;;  %s2749_s2 = inlined_call_operand.vmem [shape: f32[1,32], index: 2, kind: input, shape index: {}]   ;;  %s2750_s3 = inlined_call_operand.vmem [shape: f32[1,32], index: 3, kind: input, shape index: {}]   ;;  %s2751_s4 = inlined_call_operand.vmem [shape: bf16[2,2,32,48], index: 4, kind: input, shape index: {}]   ;;  %s2752_s5 = inlined_call_operand.vmem [shape: f32[2,2,1,48], index: 5, kind: input, shape index: {}]   ;;  %s2753_s6 = inlined_call_operand.vmem [shape: bf16[2,2,16,32], index: 6, kind: input, shape index: {}]   ;;  %s2754_s7 = inlined_call_operand.vmem [shape: f32[2,1,32], index: 7, kind: input, shape index: {}]   ;;  %s2755_s8 = inlined_call_operand.vmem [shape: f32[2,1,32], index: 8, kind: input, shape index: {}]   ;;  %s2756_s9 = inlined_call_operand.vmem [shape: f32[2,1,32], index: 9, kind: input, shape index: {}]   ;;  %s2757_s10 = inlined_call_operand.vmem [shape: bf16[2,32,64], index: 10, kind: input, shape index: {}]   ;;  %s2758_s11 = inlined_call_operand.vmem [shape: f32[2,1,64], index: 11, kind: input, shape index: {}]   ;;  %s2759_s12 = inlined_call_operand.vmem [shape: bf16[2,64,32], index: 12, kind: input, shape index: {}]   ;;  %s2760_s13 = inlined_call_operand.vmem [shape: f32[2,1,32], index: 13, kind: input, shape index: {}]   ;;  %s2761_s14 = inlined_call_operand.vmem [shape: f32[2,1,32], index: 14, kind: input, shape index: {}]   ;;  %s2762_s15 = inlined_call_operand.vmem [shape: f32[2,1,32], index: 15, kind: input, shape index: {}]   ;;  %s2763_s16 = inlined_call_operand.vmem [shape: bf16[32,32], index: 16, kind: input, shape index: {}]   ;;  %s2764_s17 = inlined_call_operand.vmem [shape: f32[1,32], index: 17, kind: input, shape index: {}]   ;;  %s2765_s18 = inlined_call_operand.vmem [shape: bf16[32,128], index: 18, kind: input, shape index: {}]   ;;  %s2766_s19 = inlined_call_operand.vmem [shape: f32[1,128], index: 19, kind: input, shape index: {}]   ;;  %s2767_s20 = inlined_call_operand.vmem [shape: f32[2,2,2,8,8], index: 20, kind: output, shape index: {0}]   ;;  %s2768_s21 = inlined_call_operand.vmem [shape: f32[2,8,128], index: 21, kind: output, shape index: {1}]  }
   0x1   :  { %2777 = sst [smem:[#allocation11_spill]] %s2747_s0  ;;  %s2469_s27 = smov 0  }
   0x2   :  { %2778 = sst [smem:[#allocation12_spill]] %s2748_s1 }
   0x3   :  { %2779 = sst [smem:[#allocation13_spill]] %s2749_s2  ;;  %s2463_s2 = smov 0  }
   0x4   :  { %2780 = sst [smem:[#allocation14_spill]] %s2750_s3  ;;  %s2471_s3 = smov 0  }
   0x5   :  { %2781 = sst [smem:[#allocation15_spill]] %s2751_s4 }
   0x6   :  { %2782 = sst [smem:[#allocation16_spill]] %s2752_s5 }
   0x7   :  { %2783 = sst [smem:[#allocation17_spill]] %s2753_s6 }
   0x8   :  { %2784 = sst [smem:[#allocation18_spill]] %s2757_s10 }
   0x9   :  { %2785 = sst [smem:[#allocation19_spill]] %s2758_s11 }
   0xa   :  { %2786 = sst [smem:[#allocation20_spill]] %s2759_s12 }
   0xb   :  { %2787 = sst [smem:[#allocation21_spill]] %s2762_s15 }
   0xc   :  { %2788 = sst [smem:[#allocation22_spill]] %s2763_s16 }
   0xd   :  { %2789 = sst [smem:[#allocation23_spill]] %s2764_s17 }
   0xe   :  { %2790 = sst [smem:[#allocation24_spill]] %s2765_s18 }
   0xf   :  { %2791 = sst [smem:[#allocation25_spill]] %s2766_s19 }
  0x10   :  { %2792 = sst [smem:[#allocation26_spill]] %s2767_s20 }
  0x11   :  { %2793 = sst [smem:[#allocation27_spill]] %s2768_s21 }
  0x12 LB: > { %2794 = sst [smem:[#allocation3_spill]] %s2329_s2  ;;  %s41_s28 = sadd.s32 1, %s2337_s26  ;;  %s2345_s3 = sphi %s2471_s3, %s32_s3   ;;  %s2341_s27 = sphi %s2469_s27, %s2837_s27   ;;  %s2337_s26 = sphi %s2467_s26, %s2836_s26   ;;  %s2333_s25 = sphi %s2465_s25, %s2835_s25   ;;  %s2329_s2 = sphi %s2463_s2, %s2834_s2  }
  0x13   : > { %2795 = sst [smem:[#allocation4_spill]] %s2337_s26  ;;  %s44_s29 = sadd.s32 1, %s2341_s27 }
  0x14   : > { %2796 = sst [smem:[#allocation5_spill]] %s2341_s27  ;;  %p42_p0 = scmp.ge.s32.totalorder %s41_s28, 2 }
  0x15   : > { %2797 = sst [smem:[#allocation6_spill]] %s2345_s3  ;;  %p2042_p1 = scmp.ge.s32.totalorder %s2345_s3, 1 }
  0x16   : > { %p716_p2 = scmp.lt.s32.totalorder %s2345_s3, 5  ;;  %s2839_s28 = smov (%p42_p0, %s41_s28), 0 }
  0x17   : > { %2798 = sst [smem:[#allocation7_spill]] %s2839_s28  ;;  %s2841_s29 = smov (!%p42_p0, %s44_s29), %s2341_s27 }
  0x18   : > { %p717_p3 = pnand %p2042_p1, %p716_p2  ;;  %p46_p4 = scmp.ge.s32.totalorder %s2841_s29, 2 }
  0x1a   : > { %s2843_s29 = smov (%p46_p4, %s2841_s29), 0  ;;  %720 = sbr.rel (%p717_p3) target bundleno = 3246 (0xcae), region = 100 }
  0x1b   : > { %2799 = sst [smem:[#allocation8_spill]] %s2843_s29 }
  0x21   : > { %p831_p5 = scmp.lt.s32.totalorder %s2333_s25, 1  ;;  %p838_p6 = scmp.lt.s32.totalorder %s2329_s2, 1 }
  0x22   : > { %s2801_s29 = sld [smem:[#allocation11_spill]]  ;;  %s2802_s19 = sld [smem:[#allocation15_spill]] }
  0x23   : > { %s2845_s25 = smov (!%p831_p5, %s2333_s25), 1  ;;  %s2804_s20 = sld [smem:[#allocation16_spill]] }
  0x24   : > { %s2499_s0 = scalar_select %p838_p6, %s2329_s2, 1 }
  0x25   : > { %s2043_s4 = sshll.u32 %s2845_s25, 3  ;;  %s2805_s6 = sld [smem:[#allocation17_spill]] }
  0x26   : > { %s2101_s27 = sshll.u32 %s2499_s0, 5  ;;  %s2046_s18 = sshll.u32 %s2499_s0, 1 }
  0x27   : > { %s2102_s5 = sshll.u32 %s2499_s0, 4  ;;  %s2807_s10 = sld [smem:[#allocation18_spill]] }
  0x28   : > { %s834_s28 = scalar_lea.vmem %s2801_s29, %s2043_s4  ;;  %s2513_s17 = scalar_lea.vmem %s2802_s19, %s2101_s27 }
  0x29   : > { %2803 = sst [smem:[#allocation9_spill]] %s2513_s17  ;;  %s2519_s30 = scalar_lea.vmem %s2804_s20, %s2046_s18 }
  0x2a   : > { %s2809_s12 = sld [smem:[#allocation20_spill]]  ;;  %s879_s16 = scalar_lea.vmem %s2761_s14, %s2499_s0 }
  0x2b   : > { %s2525_s1 = scalar_lea.vmem %s2805_s6, %s2102_s5  ;;  %s2810_s20 = sld [smem:[#allocation21_spill]] }
  0x2c   : > { %2806 = sst [smem:[#allocation10_spill]] %s2525_s1  ;;  %s2054_s23 = sshll.u32 %s2499_s0, 2 }
  0x2d   : > { %s2542_s2 = scalar_lea.vmem %s2807_s10, %s2102_s5  ;;  %s2053_s10 = sshll.u32 %s2845_s25, 1 }
  0x2e   : > { %s889_s22 = sadd.s32 %s2054_s23, %s2053_s10  ;;  %s2811_s1 = sld [smem:[#allocation27_spill]] }
  0x2f   : > { %s2055_s29 = sshll.u32 %s889_s22, 3  ;;  %s2812_s3 = sld [smem:[#allocation26_spill]] }
  0x30   : > { %s2551_s24 = scalar_lea.vmem %s2809_s12, %s2101_s27  ;;  %s2813_s15 = sld [smem:[#allocation3_spill]] }
  0x31   : > { %s882_s21 = scalar_lea.vmem %s2810_s20, %s2499_s0 }
  0x34   : > { %s2570_s27 = scalar_lea.vmem %s2811_s1, %s2043_s4 }
  0x35   : > { %s2575_s19 = scalar_lea.vmem %s2812_s3, %s2055_s29 }
  0x36   : > { %p2057_p7 = scmp.ne.s32.totalorder %s2813_s15, 0 }
  0x37   : > { %v901_v0 = vld [vmem:[%s834_s28] sm:$0xff] (!%p2057_p7)  ;;  %vm904_vm0 = vcmask (!%p2057_p7), 261120   ;;  %s2814_s11 = sld [smem:[#allocation13_spill]] (!%p2057_p7)  ;;  %s2815_s4 = sld [smem:[#allocation14_spill]] (!%p2057_p7) }
  0x38   : > { %900 = sbr.rel (%p2057_p7) target bundleno = 370 (0x172), region = 104  ;;  %v905_v1 = vsel (!%p2057_p7), %vm904_vm0, %v901_v0, 0.0 }
  0x39   : > { %906 = vadd.xlane.f32.xlu0 (!%p2057_p7), %v905_v1 }
  0x3d   : > { %v2058_v11 = vld [vmem:[%s2814_s11] ss:$0 sm:$0xff] (!%p2057_p7) }
  0x3e   : > { %v2059_v13 = vld [vmem:[%s2815_s4] ss:$0 sm:$0xff] (!%p2057_p7) }
  0xc6   : > { %v907_v2 = vpop.xlane.xlu0 %906 }
  0xc7   : > { %v909_v3 = vmul.f32 0.03125, %v907_v2 }
  0xc9   : > { %v910_v4 = vsub.f32 %v901_v0, %v909_v3 }
  0xcb   : > { %v911_v5 = vmul.f32 %v910_v4, %v910_v4 }
  0xcd   : > { %v912_v6 = vsel %vm904_vm0, %v911_v5, 0.0 }
  0xce   : > { %913 = vadd.xlane.f32.xlu0 %v912_v6 }
 0x15b   : > { %v914_v7 = vpop.xlane.xlu0 %913 }
 0x15c   : > { %v915_v8 = vmul.f32 0.03125, %v914_v7 }
 0x15e   : > { %v916_v9 = vadd.f32 1e-12, %v915_v8 }
 0x160   : > { %2271 = vrsqrt.f32 %v916_v9 }
 0x16a   : > { %v2272_v10 = vpop.eup %2271 }
 0x16b   : > { %v918_v12 = vmul.f32 %v2272_v10, %v910_v4 }
 0x16d   : > { %v925_v14 = vmul.f32 %v2058_v11, %v918_v12 }
 0x16f   : > { %v932_v15 = vadd.f32 %v2059_v13, %v925_v14 }
 0x171   : > { %933 = vst.msk [vmem:[#allocation2] sm:$0xff] %vm904_vm0, %v932_v15 }
 0x172 PF: > { %s2816_s17 = sld [smem:[#allocation9_spill]]  ;;  %v2347_v17 = vmov 0.0   ;;  %vm2348_vm1 = vmmov 0   ;;  %vm971_vm2 = vcmask 261120   ;;  %v2060_v23 = vld [vmem:[%s2519_s30] ss:$0 sm:$0xff]  ;;  %s2820_s29 = scalar_lea.vmem %s2754_s7, %s2499_s0 }
 0x173   : > { %2137 = vmatprep.subr.bf16.mxu0 %v2347_v17  ;;  %2145 = vmatprep.subr.bf16.mxu1 %v2347_v17  ;;  %v2061_v24 = vld [vmem:[%s2519_s30 + $0x1] ss:$0 sm:$0xff]  ;;  %s2349_s18 = smov 112   ;;  %vm1072_vm3 = vcmask 130048   ;;  %s2817_s20 = sld [smem:[#allocation12_spill]]  ;;  %vm1178_vm4 = vcmask 64512  }
 0x174   : > { %2141 = vmatprep.mubr.msk.bf16.mxu0 %vm2348_vm1, %v2347_v17  ;;  %2149 = vmatprep.mubr.msk.bf16.mxu1 %vm2348_vm1, %v2347_v17  ;;  %vm1210_vm5 = vcmask 1043456   ;;  %s2819_s22 = sld [smem:[#allocation10_spill]]  ;;  %s2821_s15 = scalar_lea.vmem %s2755_s8, %s2499_s0  ;;  %vm1582_vm7 = vcmask 523264  }
 0x175   : > { %s2822_s11 = scalar_lea.vmem %s2756_s9, %s2499_s0  ;;  %s2823_s28 = sld [smem:[#allocation19_spill]] }
 0x178   : > { %v2273_v16 = vld [vmem:[%s2816_s17] sm:$0xff]   ;;  %v2274_v18 = vld [vmem:[%s2816_s17 + $0x10] sm:$0xff]   ;;  %v2275_v19 = vld [vmem:[%s2816_s17 + $0x8] sm:$0xff]  }
 0x179   : > { %2138 = vmatpush3.bf16.msra.mxu0 %v2273_v16  ;;  %2146 = vmatpush3.bf16.msra.mxu1 %v2274_v18  ;;  %v2276_v20 = vld [vmem:[%s2816_s17 + $0x18] sm:$0xff]   ;;  %v2597_v21 = vld [vmem:[#allocation2] sm:$0xff]  ;;  %s2818_s23 = scalar_lea.vmem %s2817_s20, %s2845_s25  ;;  %s2350_s25 = smov 96  }
 0x17a   : > { %2139 = vmatprep.subr.bf16.mxu0 %v2347_v17  ;;  %2147 = vmatprep.subr.bf16.mxu1 %v2347_v17  ;;  %v936_v22 = vpack.c.bf16 %v2597_v21, %v2597_v21  ;;  %v2070_v42 = vld [vmem:[%s2818_s23] ss:$0 sm:$0xff]  ;;  %v2278_v15 = vld [vmem:[%s2819_s22 + $0x8] sm:$0xff]  }
 0x17b   : > { %v2277_v14 = vld [vmem:[%s2819_s22] sm:$0xff]   ;;  %s2824_s4 = scalar_lea.vmem %s2823_s28, %s2499_s0  ;;  %s2827_s22 = sld [smem:[#allocation3_spill]] }
 0x17d   : > { %2140 = vmatpush3.bf16.msra.mxu0 %v2275_v19  ;;  %2148 = vmatpush3.bf16.msra.mxu1 %v2276_v20 }
 0x17e   : > { %2153 = vmatprep.subr.bf16.mxu0 %v2347_v17  ;;  %2159 = vmatprep.subr.bf16.mxu1 %v2347_v17 }
 0x180   : > { %2142 = vmatmul.mubr.msk.bf16.vlgmr.msra.gmra.mrb[0].mxu0 %vm971_vm2, %v936_v22  ;;  %2150 = vmatmul.mubr.msk.bf16.vlgmr.msra.gmra.mrb[0].mxu1 %vm971_vm2, %v936_v22 }
 0x181   : > { %2155 = vmatprep.mubr.msk.bf16.mxu0 %vm2348_vm1, %v2347_v17  ;;  %2161 = vmatprep.mubr.msk.bf16.mxu1 %vm2348_vm1, %v2347_v17  ;;  %p2092_p8 = scmp.ne.s32.totalorder %s2827_s22, 1 }
 0x182   : > { %vm2352_vm8 = vmmov (!%p2092_p8), 0   ;;  %s2829_s3 = sld [smem:[#allocation24_spill]] (!%p2092_p8)  ;;  %s2831_s12 = sld [smem:[#allocation23_spill]] (!%p2092_p8) }
 0x253   : > { %v1009_v25 = vpop.f32.mrb[0].mxu0  ;;  %v1061_v28 = vpop.f32.mrb[0].mxu1 }
 0x254   : > { %v1010_v26 = vadd.f32 %v2060_v23, %v1009_v25  ;;  %v2143_v27 = vpop.f32.mrb[1].mxu0  ;;  %v1062_v29 = vadd.f32 %v2061_v24, %v1061_v28  ;;  %v2151_v31 = vpop.f32.mrb[1].mxu1 }
 0x255   : > { %v1012_v30 = vpop.f32.mrb[2].mxu0  ;;  %v1064_v34 = vpop.f32.mrb[2].mxu1 }
 0x256   : > { %v1067_v32 = vpack.c.bf16 %v1010_v26, %v1010_v26  ;;  %v2144_v33 = vpop.f32.mrb[3].mxu0  ;;  %v2152_v35 = vpop.f32.mrb[3].mxu1  ;;  %v1068_v36 = vpack.c.bf16 %v1062_v29, %v1062_v29 }
 0x257   : > { %v2077_v35 = vld [vmem:[%s2820_s29] ss:$0 sm:$0xff]  ;;  %s2828_s29 = sld [smem:[#allocation22_spill]] (!%p2092_p8) }
 0x258   : > { %1070 = vrot.lane.b32.xlu0 %v1067_v32, %s2349_s18 }
 0x25c   : > { %1120 = vrot.lane.b32.xlu0 %v1068_v36, %s2349_s18  ;;  %s2825_s18 = scalar_lea.vmem %s2760_s13, %s2499_s0 }
 0x2ca   : > { %v1071_v37 = vpop.permute.xlu0 %1070 }
 0x2cb   : > { %v1077_v38 = vsel %vm1072_vm3, %v1071_v37, 0 }
 0x2cc   : > { %2154 = vmatpush3.bf16.xpose.msra.mxu0 %v1077_v38 }
 0x2cd   : > { %2165 = vmatprep.subr.bf16.mxu0 %v2347_v17 }
 0x2ce   : > { %v1121_v39 = vpop.permute.xlu0 %1120 }
 0x2cf   : > { %v1126_v40 = vsel %vm1072_vm3, %v1121_v39, 0 }
 0x2d0   : > { %2160 = vmatpush3.bf16.xpose.msra.mxu1 %v1126_v40 }
 0x2d1   : > { %2171 = vmatprep.subr.bf16.mxu1 %v2347_v17 }
 0x2d3   : > { %2156 = vmatmul.mubr.msk.bf16.vlgmr.msra.gmra.mrb[4].mxu0 %vm1072_vm3, %v1067_v32 }
 0x2d4   : > { %2167 = vmatprep.mubr.msk.bf16.mxu0 %vm2348_vm1, %v2347_v17 }
 0x2d7   : > { %2162 = vmatmul.mubr.msk.bf16.vlgmr.msra.gmra.mrb[4].mxu1 %vm1072_vm3, %v1068_v36 }
 0x2d8   : > { %2173 = vmatprep.mubr.msk.bf16.mxu1 %vm2348_vm1, %v2347_v17 }
 0x3a6   : > { %v1113_v41 = vpop.f32.mrb[4].mxu0 }
 0x3a7   : > { %v1168_v43 = vmul.f32 0.25, %v1113_v41  ;;  %v2157_v44 = vpop.f32.mrb[5].mxu0 }
 0x3a8   : > { %v1116_v45 = vpop.f32.mrb[6].mxu0 }
 0x3a9   : > { %v2158_v46 = vpop.f32.mrb[7].mxu0  ;;  %v1176_v47 = vadd.f32 %v2070_v42, %v1168_v43 }
 0x3aa   : > { %v1162_v48 = vpop.f32.mrb[4].mxu1 }
 0x3ab   : > { %v1169_v49 = vmul.f32 0.25, %v1162_v48  ;;  %v2163_v50 = vpop.f32.mrb[5].mxu1  ;;  %v1179_v51 = vsel %vm1178_vm4, %v1176_v47, -inf  ;;  %v2279_v48 = vld [vmem:[%s2542_s2] sm:$0xff]  }
 0x3ac   : > { %v1165_v52 = vpop.f32.mrb[6].mxu1  ;;  %1180 = vmax.xlane.f32.xlu1 %v1179_v51 }
 0x3ad   : > { %v2164_v53 = vpop.f32.mrb[7].mxu1  ;;  %v1177_v54 = vadd.f32 %v2070_v42, %v1169_v49  ;;  %v2280_v49 = vld [vmem:[%s2542_s2 + $0x8] sm:$0xff]  }
 0x3ae   : > { %v2078_v53 = vld [vmem:[%s2821_s15] ss:$0 sm:$0xff]  ;;  %s2830_s15 = smov (!%p2092_p8), %s2829_s3 }
 0x3af   : > { %v1182_v55 = vsel %vm1178_vm4, %v1177_v54, -inf }
 0x3b0   : > { %1183 = vmax.xlane.f32.xlu1 %v1182_v55  ;;  %v2079_v55 = vld [vmem:[%s2822_s11] ss:$0 sm:$0xff] }
 0x3c1   : > { %1205 = vrot.lane.b32.xlu1 %v1067_v32, %s2350_s25 }
 0x439   : > { %v1181_v56 = vpop.xlane.xlu1 %1180 }
 0x43a   : > { %v1185_v57 = vsub.f32 %v1176_v47, %v1181_v56 }
 0x43c   : > { %v1187_v58 = vmul.f32 1.442695, %v1185_v57 }
 0x43d   : > { %v1184_v59 = vpop.xlane.xlu1 %1183 }
 0x43e   : > { %2285 = vpow2.f32 %v1187_v58  ;;  %v1186_v60 = vsub.f32 %v1177_v54, %v1184_v59  ;;  %v2281_v59 = vld [vmem:[%s2551_s24] sm:$0xff]  }
 0x440   : > { %v1189_v61 = vmul.f32 1.442695, %v1186_v60  ;;  %v2282_v60 = vld [vmem:[%s2551_s24 + $0x8] sm:$0xff]  }
 0x441   : > { %v1206_v62 = vpop.permute.xlu1 %1205 }
 0x442   : > { %2287 = vpow2.f32 %v1189_v61  ;;  %v1212_v63 = vsel %vm1210_vm5, %v1206_v62, 0  ;;  %v2283_v61 = vld [vmem:[%s2551_s24 + $0x10] sm:$0xff]   ;;  %v2284_v62 = vld [vmem:[%s2551_s24 + $0x18] sm:$0xff]   ;;  %s2832_s24 = sld [smem:[#allocation25_spill]] (!%p2092_p8) }
 0x443   : > { %2166 = vmatpush3.bf16.msra.mxu0 %v1212_v63  ;;  %v2080_v63 = vld [vmem:[%s2824_s4] ss:$0 sm:$0xff] }
 0x444   : > { %2177 = vmatprep.subr.bf16.mxu0 %v2347_v17 }
 0x448   : > { %v2286_v0 = vpop.eup %2285 }
 0x449   : > { %v1191_v1 = vsel %vm1178_vm4, %v2286_v0, 0.0 }
 0x44a   : > { %1192 = vadd.xlane.f32.xlu0 %v1191_v1 }
 0x44c   : > { %v2288_v2 = vpop.eup %2287 }
 0x44d   : > { %v1194_v3 = vsel %vm1178_vm4, %v2288_v2, 0.0 }
 0x44e   : > { %1195 = vadd.xlane.f32.xlu1 %v1194_v3 }
 0x45f   : > { %1254 = vrot.lane.b32.xlu1 %v1068_v36, %s2350_s25 }
 0x4d7   : > { %v1193_v4 = vpop.xlane.xlu0 %1192 }
 0x4d8   : > { %2289 = vrcp.f32 %v1193_v4 }
 0x4db   : > { %v1196_v5 = vpop.xlane.xlu1 %1195 }
 0x4dc   : > { %2291 = vrcp.f32 %v1196_v5 }
 0x4df   : > { %v1255_v6 = vpop.permute.xlu1 %1254 }
 0x4e0   : > { %v1260_v7 = vsel %vm1210_vm5, %v1255_v6, 0 }
 0x4e1   : > { %2172 = vmatpush3.bf16.msra.mxu1 %v1260_v7 }
 0x4e2   : > { %v2290_v8 = vpop.eup %2289  ;;  %2183 = vmatprep.subr.bf16.mxu1 %v2347_v17 }
 0x4e3   : > { %v1198_v9 = vmul.f32 %v2290_v8, %v2286_v0 }
 0x4e5   : > { %1201 = vst.msk [vmem:[%s2575_s19] sm:$0xff] %vm1178_vm4, %v1198_v9  ;;  %v1203_v10 = vpack.c.bf16 %v1198_v9, %v1198_v9 }
 0x4e6   : > { %v2292_v11 = vpop.eup %2291 }
 0x4e7   : > { %v1200_v12 = vmul.f32 %v2292_v11, %v2288_v2  ;;  %2168 = vmatmul.mubr.msk.bf16.vlgmr.msra.gmra.mrb[8].mxu0 %vm1178_vm4, %v1203_v10 }
 0x4e8   : > { %2179 = vmatprep.mubr.msk.bf16.mxu0 %vm2348_vm1, %v2347_v17  ;;  %2178 = vmatpush3.bf16.msra.mxu0 %v2277_v14 }
 0x4e9   : > { %1202 = vst.msk [vmem:[%s2575_s19 + $0x8] sm:$0xff] %vm1178_vm4, %v1200_v12  ;;  %v1204_v13 = vpack.c.bf16 %v1200_v12, %v1200_v12  ;;  %2189 = vmatprep.subr.bf16.mxu0 %v2347_v17 }
 0x4eb   : > { %2174 = vmatmul.mubr.msk.bf16.vlgmr.msra.gmra.mrb[8].mxu1 %vm1178_vm4, %v1204_v13 }
 0x4ec   : > { %2185 = vmatprep.mubr.msk.bf16.mxu1 %vm2348_vm1, %v2347_v17  ;;  %2184 = vmatpush3.bf16.msra.mxu1 %v2278_v15 }
 0x4ed   : > { %2197 = vmatprep.subr.bf16.mxu1 %v2347_v17 }
 0x5ba   : > { %v1248_v16 = vpop.f32.mrb[8].mxu0 }
 0x5bb   : > { %v1306_v18 = vpack.c.bf16 %v1248_v16, %v1248_v16  ;;  %v2169_v19 = vpop.f32.mrb[9].mxu0 }
 0x5bc   : > { %v1251_v20 = vpop.f32.mrb[10].mxu0 }
 0x5bd   : > { %v2170_v22 = vpop.f32.mrb[11].mxu0  ;;  %2180 = vmatmul.mubr.msk.bf16.vlgmr.msra.gmra.mrb[12].mxu0 %vm1072_vm3, %v1306_v18 }
 0x5be   : > { %v1296_v23 = vpop.f32.mrb[8].mxu1  ;;  %2193 = vmatprep.mubr.msk.bf16.mxu0 %vm2348_vm1, %v2347_v17  ;;  %2190 = vmatpush3.bf16.msra.mxu0 %v2279_v48 }
 0x5bf   : > { %v1307_v24 = vpack.c.bf16 %v1296_v23, %v1296_v23  ;;  %v2175_v25 = vpop.f32.mrb[9].mxu1  ;;  %2191 = vmatprep.subr.bf16.mxu0 %v2347_v17 }
 0x5c0   : > { %v1299_v26 = vpop.f32.mrb[10].mxu1 }
 0x5c1   : > { %v2176_v27 = vpop.f32.mrb[11].mxu1  ;;  %2186 = vmatmul.mubr.msk.bf16.vlgmr.msra.gmra.mrb[12].mxu1 %vm1072_vm3, %v1307_v24 }
 0x5c2   : > { %2205 = vmatprep.mubr.msk.bf16.mxu1 %vm2348_vm1, %v2347_v17  ;;  %2192 = vmatpush3.bf16.msra.mxu0 %v2280_v49  ;;  %v2090_v49 = vld [vmem:[%s879_s16] ss:$0 sm:$0xff] }
 0x5c3   : > { %2198 = vmatpush3.bf16.msra.mxu1 %v2281_v59  ;;  %v1666_v59 = vld [vmem:[%s2831_s12] sm:$0x1] (!%p2092_p8) }
 0x5c4   : > { %2199 = vmatprep.subr.bf16.mxu1 %v2347_v17 }
 0x5c7   : > { %2200 = vmatpush3.bf16.msra.mxu1 %v2282_v60 }
 0x5c8   : > { %2201 = vmatprep.subr.bf16.mxu1 %v2347_v17 }
 0x5cb   : > { %2202 = vmatpush3.bf16.msra.mxu1 %v2283_v61 }
 0x5cc   : > { %2203 = vmatprep.subr.bf16.mxu1 %v2347_v17 }
 0x5cf   : > { %2204 = vmatpush3.bf16.msra.mxu1 %v2284_v62 }
 0x690   : > { %v1351_v28 = vpop.f32.mrb[12].mxu0 }
 0x691   : > { %v2181_v29 = vpop.f32.mrb[13].mxu0  ;;  %v1406_v33 = vsel %vm971_vm2, %v1351_v28, 0.0 }
 0x692   : > { %v1354_v30 = vpop.f32.mrb[14].mxu0 }
 0x693   : > { %v2182_v31 = vpop.f32.mrb[15].mxu0 }
 0x694   : > { %v1400_v32 = vpop.f32.mrb[12].mxu1 }
 0x695   : > { %v1407_v34 = vsel %vm971_vm2, %v1400_v32, 0.0  ;;  %v2187_v36 = vpop.f32.mrb[13].mxu1  ;;  %v2084_v32 = vld [vmem:[%s2825_s18] ss:$0 sm:$0xff] }
 0x696   : > { %v1408_v37 = vadd.f32 %v1407_v34, %v1406_v33  ;;  %v1403_v38 = vpop.f32.mrb[14].mxu1 }
 0x697   : > { %v2188_v39 = vpop.f32.mrb[15].mxu1 }
 0x698   : > { %v1416_v40 = vadd.f32 %v2077_v35, %v1408_v37 }
 0x69a   : > { %v1417_v41 = vadd.f32 %v1416_v40, %v2597_v21 }
 0x69c   : > { %v1420_v42 = vsel %vm971_vm2, %v1417_v41, 0.0 }
 0x69d   : > { %1421 = vadd.xlane.f32.xlu1 %v1420_v42 }
 0x72a   : > { %v1422_v43 = vpop.xlane.xlu1 %1421 }
 0x72b   : > { %v1424_v44 = vmul.f32 0.03125, %v1422_v43 }
 0x72d   : > { %v1425_v45 = vsub.f32 %v1417_v41, %v1424_v44 }
 0x72f   : > { %v1426_v46 = vmul.f32 %v1425_v45, %v1425_v45 }
 0x731   : > { %v1427_v47 = vsel %vm971_vm2, %v1426_v46, 0.0 }
 0x732   : > { %1428 = vadd.xlane.f32.xlu0 %v1427_v47 }
 0x7bf   : > { %v1429_v21 = vpop.xlane.xlu0 %1428 }
 0x7c0   : > { %v1430_v50 = vmul.f32 0.03125, %v1429_v21 }
 0x7c2   : > { %v1431_v51 = vadd.f32 1e-12, %v1430_v50  ;;  %v2091_v50 = vld [vmem:[%s882_s21] ss:$0 sm:$0xff] }
 0x7c4   : > { %2293 = vrsqrt.f32 %v1431_v51 }
 0x7ce   : > { %v2294_v52 = vpop.eup %2293 }
 0x7cf   : > { %v1433_v54 = vmul.f32 %v2294_v52, %v1425_v45 }
 0x7d1   : > { %v1440_v56 = vmul.f32 %v2078_v53, %v1433_v54  ;;  %v2301_v53 = vld [vmem:[%s2828_s29] sm:$0xff] (!%p2092_p8)   ;;  %v2351_v54 = vmov (!%p2092_p8), 0.0  }
 0x7d2   : > { %2209 = vmatprep.subr.bf16.mxu0 (!%p2092_p8), %v2351_v54  ;;  %2217 = vmatprep.subr.bf16.mxu1 (!%p2092_p8), %v2351_v54 }
 0x7d3   : > { %v1447_v57 = vadd.f32 %v2079_v55, %v1440_v56  ;;  %v2302_v55 = vld [vmem:[%s2828_s29 + $0x8] sm:$0xff] (!%p2092_p8)  }
 0x7d5   : > { %v1452_v58 = vpack.c.bf16 %v1447_v57, %v1447_v57 }
 0x7d7   : > { %2194 = vmatmul.mubr.msk.bf16.vlgmr.msra.gmra.mrb[16].mxu0 %vm971_vm2, %v1452_v58  ;;  %v2304_v58 = vld [vmem:[%s2830_s15 + $0x8] sm:$0xff] (!%p2092_p8)  }
 0x7d8   : > { %2210 = vmatpush3.bf16.msra.mxu0 (!%p2092_p8), %v2301_v53  ;;  %2213 = vmatprep.mubr.msk.bf16.mxu0 (!%p2092_p8), %vm2352_vm8, %v2351_v54 }
 0x7d9   : > { %2211 = vmatprep.subr.bf16.mxu0 (!%p2092_p8), %v2351_v54 }
 0x7dc   : > { %2212 = vmatpush3.bf16.msra.mxu0 (!%p2092_p8), %v2302_v55 }
 0x8aa   : > { %v1509_v0 = vpop.f32.mrb[16].mxu0 }
 0x8ab   : > { %v1510_v1 = vadd.f32 %v2080_v63, %v1509_v0  ;;  %v2195_v2 = vpop.f32.mrb[17].mxu0 }
 0x8ac   : > { %v1512_v3 = vpop.f32.mrb[18].mxu0 }
 0x8ad   : > { %v1516_v4 = vmul.f32 0.70710677, %v1510_v1  ;;  %v2196_v5 = vpop.f32.mrb[19].mxu0  ;;  %v1515_v28 = vmul.f32 0.5, %v1510_v1  ;;  %v1784_v3 = vlaneseq (!%p2092_p8) }
 0x8ae   : > { %v1728_v5 = vld [vmem:[%s2832_s24] sm:$0x1] (!%p2092_p8) }
 0x8af   : > { %v1517_v6 = vand.u32 2147483647, %v1516_v4  ;;  %vm1537_vm6 = vcmp.ge.f32.partialorder %v1516_v4, 0.0  ;;  %v1785_v4 = vshrl.u32 (!%p2092_p8), %v1784_v3, 7 }
 0x8b1   : > { %v1518_v7 = vmul.f32 0.3275911, %v1517_v6  ;;  %v1531_v9 = vmul.f32 %v1517_v6, %v1517_v6  ;;  %v1786_v6 = vsub.s32 (!%p2092_p8), 0, %v1785_v4 }
 0x8b3   : > { %v1519_v8 = vadd.f32 1.0, %v1518_v7  ;;  %v1532_v17 = vsub.f32 0.0, %v1531_v9 }
 0x8b5   : > { %2295 = vrcp.f32 %v1519_v8  ;;  %v1533_v13 = vmul.f32 1.442695, %v1532_v17 }
 0x8b7   : > { %2297 = vpow2.f32 %v1533_v13 }
 0x8bf   : > { %v2296_v10 = vpop.eup %2295 }
 0x8c0   : > { %v1522_v11 = vmul.f32 1.0614054, %v2296_v10 }
 0x8c1   : > { %v2298_v23 = vpop.eup %2297 }
 0x8c2   : > { %v1523_v12 = vadd.f32 -1.4531521, %v1522_v11 }
 0x8c4   : > { %v1524_v14 = vmul.f32 %v2296_v10, %v1523_v12 }
 0x8c6   : > { %v1525_v15 = vadd.f32 1.4214138, %v1524_v14 }
 0x8c8   : > { %v1526_v16 = vmul.f32 %v2296_v10, %v1525_v15 }
 0x8ca   : > { %v1527_v18 = vadd.f32 -0.28449672, %v1526_v16 }
 0x8cc   : > { %v1528_v19 = vmul.f32 %v2296_v10, %v1527_v18 }
 0x8ce   : > { %v1529_v20 = vadd.f32 0.2548296, %v1528_v19 }
 0x8d0   : > { %v1530_v22 = vmul.f32 %v2296_v10, %v1529_v20 }
 0x8d2   : > { %v1535_v24 = vmul.f32 %v2298_v23, %v1530_v22 }
 0x8d4   : > { %v1536_v25 = vsub.f32 1.0, %v1535_v24 }
 0x8d6   : > { %v1538_v26 = vsub.f32 0.0, %v1536_v25 }
 0x8d8   : > { %v1539_v27 = vsel %vm1537_vm6, %v1536_v25, %v1538_v26 }
 0x8d9   : > { %v1540_v29 = vadd.f32 1.0, %v1539_v27 }
 0x8db   : > { %v1541_v30 = vmul.f32 %v1540_v29, %v1515_v28 }
 0x8dd   : > { %v1550_v31 = vpack.c.bf16 %v1541_v30, %v1541_v30 }
 0x8df   : > { %2206 = vmatmul.mubr.msk.bf16.vlgmr.msra.gmra.mrb[16].mxu1 %vm1582_vm7, %v1550_v31 }
 0x8e0   : > { %2221 = vmatprep.mubr.msk.bf16.mxu1 (!%p2092_p8), %vm2352_vm8, %v2351_v54 }
 0x9b2   : > { %v1620_v33 = vpop.f32.mrb[16].mxu1 }
 0x9b3   : > { %v1621_v34 = vadd.f32 %v2084_v32, %v1620_v33  ;;  %v2207_v35 = vpop.f32.mrb[17].mxu1 }
 0x9b4   : > { %v1623_v36 = vpop.f32.mrb[18].mxu1 }
 0x9b5   : > { %v2208_v37 = vpop.f32.mrb[19].mxu1  ;;  %v1626_v38 = vadd.f32 %v1621_v34, %v1447_v57  ;;  %v2303_v57 = vld [vmem:[%s2829_s3] sm:$0xff] (!%p2092_p8)  }
 0x9b6   : > { %2218 = vmatpush3.bf16.msra.mxu1 (!%p2092_p8), %v2303_v57 }
 0x9b7   : > { %v1629_v39 = vsel %vm971_vm2, %v1626_v38, 0.0  ;;  %2219 = vmatprep.subr.bf16.mxu1 (!%p2092_p8), %v2351_v54 }
 0x9b8   : > { %1630 = vadd.xlane.f32.xlu0 %v1629_v39 }
 0x9ba   : > { %2220 = vmatpush3.bf16.msra.mxu1 (!%p2092_p8), %v2304_v58 }
 0xa45   : > { %v1631_v40 = vpop.xlane.xlu0 %1630 }
 0xa46   : > { %v1632_v41 = vmul.f32 0.03125, %v1631_v40 }
 0xa48   : > { %v1633_v42 = vsub.f32 %v1626_v38, %v1632_v41 }
 0xa4a   : > { %v1634_v43 = vmul.f32 %v1633_v42, %v1633_v42 }
 0xa4c   : > { %v1635_v44 = vsel %vm971_vm2, %v1634_v43, 0.0 }
 0xa4d   : > { %1636 = vadd.xlane.f32.xlu0 %v1635_v44 }
 0xada   : > { %v1637_v45 = vpop.xlane.xlu0 %1636 }
 0xadb   : > { %v1638_v46 = vmul.f32 0.03125, %v1637_v45 }
 0xadd   : > { %v1639_v47 = vadd.f32 1e-12, %v1638_v46 }
 0xadf   : > { %2299 = vrsqrt.f32 %v1639_v47 }
 0xae9   : > { %v2300_v48 = vpop.eup %2299 }
 0xaea   : > { %v1641_v21 = vmul.f32 %v2300_v48, %v1633_v42  ;;  %1660 = sbr.rel (%p2092_p8) target bundleno = 3246 (0xcae), region = 108 }
 0xaec   : > { %v1648_v51 = vmul.f32 %v2090_v49, %v1641_v21 }
 0xaee   : > { %v1655_v52 = vadd.f32 %v2091_v50, %v1648_v51 }
 0xaf0   : > { %1656 = vst.msk [vmem:[#allocation2] sm:$0xff] %vm971_vm2, %v1655_v52  ;;  %v1665_v56 = vpack.c.bf16 (!%p2092_p8), %v1655_v52, %v1655_v52 }
 0xaf2   : > { %2214 = vmatmul.mubr.msk.bf16.vlgmr.msra.gmra.mrb[0].mxu0 %vm971_vm2, %v1665_v56 }
 0xbc5   : > { %v1716_v60 = vpop.f32.mrb[0].mxu0 }
 0xbc6   : > { %v1717_v61 = vadd.f32 %v1716_v60, %v1666_v59  ;;  %v2215_v62 = vpop.f32.mrb[1].mxu0 }
 0xbc7   : > { %v1719_v63 = vpop.f32.mrb[2].mxu0 }
 0xbc8   : > { %2305 = vtanh.f32 %v1717_v61  ;;  %v2216_v0 = vpop.f32.mrb[3].mxu0 }
 0xbd2   : > { %v2306_v1 = vpop.eup %2305 }
 0xbd3   : > { %v1727_v2 = vpack.c.bf16 %v2306_v1, %v2306_v1 }
 0xbd5   : > { %2222 = vmatmul.mubr.msk.bf16.vlgmr.msra.gmra.mrb[0].mxu1 %vm971_vm2, %v1727_v2 }
 0xca8   : > { %v1778_v7 = vpop.f32.mrb[0].mxu1 }
 0xca9   : > { %v1779_v8 = vadd.f32 %v1778_v7, %v1728_v5  ;;  %v2223_v9 = vpop.f32.mrb[1].mxu1 }
 0xcaa   : > { %v1781_v10 = vpop.f32.mrb[2].mxu1 }
 0xcab   : > { %v1787_v17 = vrot.slane %v1779_v8, %v1786_v6  ;;  %v2224_v11 = vpop.f32.mrb[3].mxu1 }
 0xcad   : > { %1788 = vst [vmem:[%s2570_s27] sm:$0xff] %v1787_v17 }
 0xcae PF: > { %s2833_s17 = sld [smem:[#allocation6_spill]]  ;;  %s2834_s2 = sld [smem:[#allocation4_spill]] }
 0xcaf   : > { %s2835_s25 = sld [smem:[#allocation5_spill]]  ;;  %s2836_s26 = sld [smem:[#allocation7_spill]] }
 0xcb0   : > { %s2837_s27 = sld [smem:[#allocation8_spill]] }
 0xcb4   : > { %s32_s3 = sadd.s32 1, %s2833_s17  }
 0xcb5   : > { %p29_p9 = scmp.ge.s32.totalorder %s32_s3, 6  }
 0xcb7   :  { %31 = sbr.rel (!%p29_p9) target bundleno = 18 (0x12), region = 189 }

</bundles_post_ra>
